<compile_context>
chip_gen: v7x
topology: tpu7x:2x2x1
jax: 0.10.0
libtpu: 0.0.40
codegen_flags: <defaults>
</compile_context>

<pallas_src>
import functools

import jax
import jax.numpy as jnp
import numpy as np
from jax import lax
from jax.experimental import pallas as pl
from jax.experimental.pallas import tpu as pltpu


def _round_up(x, m):
    return -(-x // m) * m


def _dice_sums_kernel(g_ref, x_ref, inter_ref, union_ref, inter_acc, union_acc,
                      *, chunk_rows, valid_elems, convert_logits_to_probs):
    """Per-sample partial sums: intersection = sum(x*g), union = sum(x+g).

    Block shapes: g_ref / x_ref are (nb, rb, 128); outputs are (nb, 1);
    accumulators are (nb, 128) f32 VMEM scratch that persists across the
    reduction (k) axis.  grid = (ceil(N/nb), num_k): axis 0 over batch blocks
    ("parallel"), axis 1 over row-chunks of the flattened per-sample data
    ("arbitrary").  Only the last k block can contain invalid (padded / OOB)
    elements, so full blocks take an unmasked fast path.
    """
    _, rb, _ = x_ref.shape
    k = pl.program_id(1)
    nk = pl.num_programs(1)

    @pl.when(k == 0)
    def _():
        inter_acc[...] = jnp.zeros_like(inter_acc)
        union_acc[...] = jnp.zeros_like(union_acc)

    nchunks = rb // chunk_rows
    row0 = k * rb  # first (sample-relative) 128-lane row of this block

    def make_body(mask_tail):
        def body(j, carry):
            it, un = carry
            x = x_ref[:, pl.ds(j * chunk_rows, chunk_rows), :].astype(jnp.float32)
            g = g_ref[:, pl.ds(j * chunk_rows, chunk_rows), :].astype(jnp.float32)
            if convert_logits_to_probs:
                # sigmoid(x) == 0.5*(tanh(x/2)+1): a single EUP transcendental.
                x = 0.5 * (jnp.tanh(0.5 * x) + 1.0)
            prod = x * g
            sums = x + g
            if mask_tail:
                # Zero out lane-pad elements and Pallas OOB rows of the partial
                # last block: per-sample element index >= valid_elems.
                r = lax.broadcasted_iota(jnp.int32, (chunk_rows, 128), 0)
                l = lax.broadcasted_iota(jnp.int32, (chunk_rows, 128), 1)
                idx = (row0 + j * chunk_rows + r) * 128 + l
                valid = (idx < valid_elems)[None]  # (1, cr, 128), broadcasts over nb
                prod = jnp.where(valid, prod, 0.0)
                sums = jnp.where(valid, sums, 0.0)
            it = it + jnp.sum(prod, axis=1)  # (nb, 128): pure VPU adds per chunk
            un = un + jnp.sum(sums, axis=1)
            return it, un
        return body

    carry0 = (inter_acc[...], union_acc[...])

    @pl.when(k < nk - 1)
    def _():
        it, un = lax.fori_loop(0, nchunks, make_body(False), carry0, unroll=True)
        inter_acc[...] = it
        union_acc[...] = un

    @pl.when(k == nk - 1)
    def _():
        it, un = lax.fori_loop(0, nchunks, make_body(True), carry0, unroll=True)
        # Cross-lane reduce exactly once per sample.
        inter_ref[...] = jnp.sum(it, axis=-1, keepdims=True)
        union_ref[...] = jnp.sum(un, axis=-1, keepdims=True)


def _choose_tiling(n, r):
    """Pick (nb, rb, cr): samples per grid step, 128-lane rows per reduction
    block, rows per in-kernel chunk.  Guarantees rb <= r (only the standard
    partial *last* block can occur) and rb % cr == 0."""
    if r > 128:
        nb = 1
        cr = 64
        # <= 512 KiB f32 per x block and >= 2 reduction steps per sample so the
        # BlockSpec double-buffer always has a prefetch in flight.
        rb = max(cr, min(1024, _round_up(-(-r // 2), cr)))
    else:
        # Tiny samples: whole sample per block (block dim == array dim, always
        # legal), several samples per grid step to amortize per-step overhead.
        nb = int(min(n, 8, max(1, 128 // r)))
        rb = r
        cr = r
    return nb, rb, cr


@functools.partial(
    jax.jit,
    static_argnames=("convert_logits_to_probs", "reduce", "downcast_ground_truth"))
def dice_loss(ground_truth, inp, *, convert_logits_to_probs=False, reduce=True,
              downcast_ground_truth=True):
    """Dice loss matching PyTorch DiceLoss.forward semantics.

    ground_truth, inp: same-shape arrays; all dims after the batch dim are
    reduced.  Pass the mask as bf16/int8 to cut HBM traffic (exact for 0/1).
    """
    assert inp.shape == ground_truth.shape
    # NOTE: PyTorch's `input.squeeze(0)` for 5-D inputs is a no-op (its result
    # is discarded), so it is intentionally not reproduced here.
    N = inp.shape[0]
    M = int(np.prod(inp.shape[1:]))

    g = ground_truth
    if g.dtype == jnp.bool_:
        g = g.astype(jnp.bfloat16)
    g = g.reshape(N, M)
    x = inp.reshape(N, M)

    # Lane padding only (needed for the (N, R, 128) view); the kernel masks all
    # per-sample elements >= M, so the pad value is irrelevant (use zeros).
    M_pad = _round_up(M, 128)
    if M_pad != M:
        # A copy is being made anyway, so also downcast a wide 0/1 mask to bf16
        # here (exact for {0,1}).  On the copy-free path below a standalone
        # cast would only ADD HBM traffic, so it is not done there.
        if downcast_ground_truth and g.dtype.itemsize > 2:
            g = g.astype(jnp.bfloat16)
        pad = M_pad - M
        g = jnp.pad(g, ((0, 0), (0, pad)))
        x = jnp.pad(x, ((0, 0), (0, pad)))
    R = M_pad // 128

    g3 = g.reshape(N, R, 128)
    x3 = x.reshape(N, R, 128)

    nb, rb, cr = _choose_tiling(N, R)
    grid = (pl.cdiv(N, nb), pl.cdiv(R, rb))

    kernel = functools.partial(
        _dice_sums_kernel, chunk_rows=cr, valid_elems=M,
        convert_logits_to_probs=convert_logits_to_probs)

    bytes_in = g3.dtype.itemsize + x3.dtype.itemsize
    cost = pl.CostEstimate(
        flops=4 * N * M_pad,
        transcendentals=N * M_pad if convert_logits_to_probs else 0,
        bytes_accessed=N * M_pad * bytes_in + 2 * N * 4)

    inter, union = pl.pallas_call(
        kernel,
        out_shape=(jax.ShapeDtypeStruct((N, 1), jnp.float32),
                   jax.ShapeDtypeStruct((N, 1), jnp.float32)),
        grid_spec=pltpu.PrefetchScalarGridSpec(
            num_scalar_prefetch=0,
            grid=grid,
            in_specs=[
                pl.BlockSpec((nb, rb, 128), lambda i, k: (i, k, 0)),
                pl.BlockSpec((nb, rb, 128), lambda i, k: (i, k, 0)),
            ],
            out_specs=[
                pl.BlockSpec((nb, 1), lambda i, k: (i, 0)),
                pl.BlockSpec((nb, 1), lambda i, k: (i, 0)),
            ],
            scratch_shapes=[
                pltpu.VMEM((nb, 128), jnp.float32),
                pltpu.VMEM((nb, 128), jnp.float32),
            ]),
        compiler_params=pltpu.CompilerParams(
            dimension_semantics=("parallel", "arbitrary")),
        cost_estimate=cost,
    )(g3, x3)

    inter = inter[:, 0]  # (N,)
    union = union[:, 0]  # (N,)

    union_total = jnp.sum(union)
    # Match PyTorch: only the total-union==0 case is guarded; a per-sample zero
    # union with a nonzero total still divides by zero, as in the original.
    dice = jnp.where(union_total == 0.0, 0.0, 2.0 * inter / union)
    if reduce:
        dice = jnp.mean(dice)
    return 1.0 - dice


def _reference_dice_loss(ground_truth, inp, convert_logits_to_probs=False,
                         reduce=True):
    """Pure-JAX replica of the PyTorch forward for verification."""
    ground_truth = ground_truth.astype(jnp.float32)
    inp = inp.astype(jnp.float32)
    if convert_logits_to_probs:
        inp = jax.nn.sigmoid(inp)
    axes = tuple(range(1, inp.ndim))
    intersection = jnp.sum(inp * ground_truth, axis=axes)
    union = jnp.sum(inp + ground_truth, axis=axes)
    dice = jnp.where(jnp.sum(union) == 0.0, 0.0, 2.0 * intersection / union)
    if reduce:
        dice = jnp.mean(dice)
    return 1.0 - dice


if __name__ == "__main__":
    key = jax.random.PRNGKey(0)
    k1, k2, k3, k4, k5, k6 = jax.random.split(key, 6)

    # Case 1: lane-aligned shape (copy-free path), sigmoid + mean-reduce.
    # The 0/1 mask is built directly as bf16 (exact, 25% less HBM traffic).
    N, C, H, W = 2, 4, 16, 16
    gt1 = (jax.random.uniform(k1, (N, C, H, W)) > 0.5).astype(jnp.bfloat16)
    x1 = jax.random.normal(k2, (N, C, H, W), dtype=jnp.float32)
    out1 = jax.block_until_ready(
        dice_loss(gt1, x1, convert_logits_to_probs=True, reduce=True))
    ref1 = jax.block_until_ready(
        _reference_dice_loss(gt1, x1, convert_logits_to_probs=True, reduce=True))
    np.testing.assert_allclose(np.asarray(out1), np.asarray(ref1),
                               rtol=1e-4, atol=1e-5)

    # Case 2: ragged shape (M % 128 != 0) exercising lane padding + in-kernel
    # tail masking and the packed multi-sample-per-step path, no reduction.
    gt2 = (jax.random.uniform(k3, (2, 3, 10, 10)) > 0.5).astype(jnp.float32)
    x2 = jax.random.normal(k4, (2, 3, 10, 10), dtype=jnp.float32)
    out2 = jax.block_until_ready(
        dice_loss(gt2, x2, convert_logits_to_probs=True, reduce=False))
    ref2 = jax.block_until_ready(
        _reference_dice_loss(gt2, x2, convert_logits_to_probs=True, reduce=False))
    np.testing.assert_allclose(np.asarray(out2), np.asarray(ref2),
                               rtol=1e-4, atol=1e-5)

    # Case 3: multi-step reduction axis (num_k == 2) with a partial last block
    # (row-level OOB masking, no wrapper pad), probabilities passed directly.
    gt3 = (jax.random.uniform(k5, (1, 1, 300, 256)) > 0.5).astype(jnp.bfloat16)
    x3 = jax.random.uniform(k6, (1, 1, 300, 256), dtype=jnp.float32)
    out3 = jax.block_until_ready(
        dice_loss(gt3, x3, convert_logits_to_probs=False, reduce=True))
    ref3 = jax.block_until_ready(
        _reference_dice_loss(gt3, x3, convert_logits_to_probs=False, reduce=True))
    np.testing.assert_allclose(np.asarray(out3), np.asarray(ref3),
                               rtol=1e-4, atol=1e-5)

    print("KERNEL_OK")
</pallas_src>

<mosaic_0001>
module attributes {stable_mosaic.version = 11 : i64} {
  func.func @_dice_sums_kernel(%arg0: i32, %arg1: i32, %arg2: memref<2x8x128xbf16, #tpu.memory_space<vmem>>, %arg3: memref<2x8x128xf32, #tpu.memory_space<vmem>>, %arg4: memref<2x1xf32, #tpu.memory_space<vmem>>, %arg5: memref<2x1xf32, #tpu.memory_space<vmem>>, %arg6: memref<2x128xf32, #tpu.memory_space<vmem>>, %arg7: memref<2x128xf32, #tpu.memory_space<vmem>>) attributes {dimension_semantics = [#tpu.dimension_semantics<parallel>, #tpu.dimension_semantics<arbitrary>], iteration_bounds = array<i64: 1, 1>, scalar_prefetch = 0 : i64, scratch_operands = 2 : i64, tpu.core_type = #tpu.core_type<tc>, window_params = [{transform_indices = @transform_0, window_bounds = array<i64: 2, 8, 128>}, {transform_indices = @transform_1, window_bounds = array<i64: 2, 8, 128>}, {transform_indices = @transform_2, window_bounds = array<i64: 2, 1>}, {transform_indices = @transform_3, window_bounds = array<i64: 2, 1>}]} {
    %c0_i32 = arith.constant 0 : i32
    %0 = arith.cmpi eq, %arg1, %c0_i32 : i32
    %1 = arith.extui %0 : i1 to i32
    %c0_i32_0 = arith.constant 0 : i32
    %2 = arith.cmpi ne, %1, %c0_i32_0 : i32
    scf.if %2 {
      %cst = arith.constant 0.000000e+00 : f32
      %12 = vector.broadcast %cst : f32 to vector<2x128xf32>
      %c0_8 = arith.constant 0 : index
      %c0_9 = arith.constant 0 : index
      %13 = vector.load %arg6[%c0_8, %c0_9] : memref<2x128xf32, #tpu.memory_space<vmem>>, vector<2x128xf32>
      tpu.vector_store %arg6[%c0_8, %c0_9], %12 {strides = array<i32>} : memref<2x128xf32, #tpu.memory_space<vmem>>, vector<2x128xf32>,
      %cst_10 = arith.constant 0.000000e+00 : f32
      %14 = vector.broadcast %cst_10 : f32 to vector<2x128xf32>
      %c0_11 = arith.constant 0 : index
      %c0_12 = arith.constant 0 : index
      %15 = vector.load %arg7[%c0_11, %c0_12] : memref<2x128xf32, #tpu.memory_space<vmem>>, vector<2x128xf32>
      tpu.vector_store %arg7[%c0_11, %c0_12], %14 {strides = array<i32>} : memref<2x128xf32, #tpu.memory_space<vmem>>, vector<2x128xf32>,
    } else {
    }
    %c8_i32 = arith.constant 8 : i32
    %3 = arith.muli %arg1, %c8_i32 : i32
    %c0 = arith.constant 0 : index
    %c0_1 = arith.constant 0 : index
    %4 = vector.load %arg6[%c0, %c0_1] : memref<2x128xf32, #tpu.memory_space<vmem>>, vector<2x128xf32>
    %c0_2 = arith.constant 0 : index
    %c0_3 = arith.constant 0 : index
    %5 = vector.load %arg7[%c0_2, %c0_3] : memref<2x128xf32, #tpu.memory_space<vmem>>, vector<2x128xf32>
    %c0_i32_4 = arith.constant 0 : i32
    %6 = arith.cmpi slt, %arg1, %c0_i32_4 : i32
    %7 = arith.extui %6 : i1 to i32
    %c0_i32_5 = arith.constant 0 : i32
    %8 = arith.cmpi ne, %7, %c0_i32_5 : i32
    scf.if %8 {
      %c0_i32_8 = arith.constant 0 : i32
      %c8_i32_9 = arith.constant 8 : i32
      %12 = arith.muli %c0_i32_8, %c8_i32_9 : i32
      %c0_10 = arith.constant 0 : index
      %13 = arith.index_cast %12 : i32 to index
      %c0_11 = arith.constant 0 : index
      %14 = vector.load %arg3[%c0_10, %13, %c0_11] : memref<2x8x128xf32, #tpu.memory_space<vmem>>, vector<2x8x128xf32>
      %c8_i32_12 = arith.constant 8 : i32
      %15 = arith.muli %c0_i32_8, %c8_i32_12 : i32
      %c0_13 = arith.constant 0 : index
      %16 = arith.index_cast %15 : i32 to index
      %c0_14 = arith.constant 0 : index
      %17 = vector.load %arg2[%c0_13, %16, %c0_14] : memref<2x8x128xbf16, #tpu.memory_space<vmem>>, vector<2x8x128xbf16>
      %18 = arith.extf %17 : vector<2x8x128xbf16> to vector<2x8x128xf32>
      %cst = arith.constant 5.000000e-01 : f32
      %19 = vector.broadcast %cst : f32 to vector<2x8x128xf32>
      %20 = arith.mulf %19, %14 : vector<2x8x128xf32>
      %21 = math.tanh %20 : vector<2x8x128xf32>
      %cst_15 = arith.constant 1.000000e+00 : f32
      %22 = vector.broadcast %cst_15 : f32 to vector<2x8x128xf32>
      %23 = arith.addf %21, %22 : vector<2x8x128xf32>
      %cst_16 = arith.constant 5.000000e-01 : f32
      %24 = vector.broadcast %cst_16 : f32 to vector<2x8x128xf32>
      %25 = arith.mulf %24, %23 : vector<2x8x128xf32>
      %26 = arith.mulf %25, %18 : vector<2x8x128xf32>
      %27 = arith.addf %25, %18 : vector<2x8x128xf32>
      %cst_17 = arith.constant dense<0.000000e+00> : vector<2x128xf32>
      %28 = vector.multi_reduction <add>, %26, %cst_17 [1] : vector<2x8x128xf32> to vector<2x128xf32>
      %29 = arith.addf %4, %28 : vector<2x128xf32>
      %cst_18 = arith.constant dense<0.000000e+00> : vector<2x128xf32>
      %30 = vector.multi_reduction <add>, %27, %cst_18 [1] : vector<2x8x128xf32> to vector<2x128xf32>
      %31 = arith.addf %5, %30 : vector<2x128xf32>
      %c1_i32 = arith.constant 1 : i32
      %c0_19 = arith.constant 0 : index
      %c0_20 = arith.constant 0 : index
      %32 = vector.load %arg6[%c0_19, %c0_20] : memref<2x128xf32, #tpu.memory_space<vmem>>, vector<2x128xf32>
      tpu.vector_store %arg6[%c0_19, %c0_20], %29 {strides = array<i32>} : memref<2x128xf32, #tpu.memory_space<vmem>>, vector<2x128xf32>,
      %c0_21 = arith.constant 0 : index
      %c0_22 = arith.constant 0 : index
      %33 = vector.load %arg7[%c0_21, %c0_22] : memref<2x128xf32, #tpu.memory_space<vmem>>, vector<2x128xf32>
      tpu.vector_store %arg7[%c0_21, %c0_22], %31 {strides = array<i32>} : memref<2x128xf32, #tpu.memory_space<vmem>>, vector<2x128xf32>,
    } else {
    }
    %c0_i32_6 = arith.constant 0 : i32
    %9 = arith.cmpi eq, %arg1, %c0_i32_6 : i32
    %10 = arith.extui %9 : i1 to i32
    %c0_i32_7 = arith.constant 0 : i32
    %11 = arith.cmpi ne, %10, %c0_i32_7 : i32
    scf.if %11 {
      %c0_i32_8 = arith.constant 0 : i32
      %c8_i32_9 = arith.constant 8 : i32
      %12 = arith.muli %c0_i32_8, %c8_i32_9 : i32
      %c0_10 = arith.constant 0 : index
      %13 = arith.index_cast %12 : i32 to index
      %c0_11 = arith.constant 0 : index
      %14 = vector.load %arg3[%c0_10, %13, %c0_11] : memref<2x8x128xf32, #tpu.memory_space<vmem>>, vector<2x8x128xf32>
      %c8_i32_12 = arith.constant 8 : i32
      %15 = arith.muli %c0_i32_8, %c8_i32_12 : i32
      %c0_13 = arith.constant 0 : index
      %16 = arith.index_cast %15 : i32 to index
      %c0_14 = arith.constant 0 : index
      %17 = vector.load %arg2[%c0_13, %16, %c0_14] : memref<2x8x128xbf16, #tpu.memory_space<vmem>>, vector<2x8x128xbf16>
      %18 = arith.extf %17 : vector<2x8x128xbf16> to vector<2x8x128xf32>
      %cst = arith.constant 5.000000e-01 : f32
      %19 = vector.broadcast %cst : f32 to vector<2x8x128xf32>
      %20 = arith.mulf %19, %14 : vector<2x8x128xf32>
      %21 = math.tanh %20 : vector<2x8x128xf32>
      %cst_15 = arith.constant 1.000000e+00 : f32
      %22 = vector.broadcast %cst_15 : f32 to vector<2x8x128xf32>
      %23 = arith.addf %21, %22 : vector<2x8x128xf32>
      %cst_16 = arith.constant 5.000000e-01 : f32
      %24 = vector.broadcast %cst_16 : f32 to vector<2x8x128xf32>
      %25 = arith.mulf %24, %23 : vector<2x8x128xf32>
      %26 = arith.mulf %25, %18 : vector<2x8x128xf32>
      %27 = arith.addf %25, %18 : vector<2x8x128xf32>
      %28 = tpu.iota {dimensions = array<i32: 0>} : vector<8x128xi32>
      %29 = tpu.iota {dimensions = array<i32: 1>} : vector<8x128xi32>
      %c8_i32_17 = arith.constant 8 : i32
      %30 = arith.muli %c0_i32_8, %c8_i32_17 : i32
      %31 = arith.addi %3, %30 : i32
      %32 = vector.broadcast %31 : i32 to vector<8x128xi32>
      %33 = arith.addi %32, %28 : vector<8x128xi32>
      %c128_i32 = arith.constant 128 : i32
      %34 = vector.broadcast %c128_i32 : i32 to vector<8x128xi32>
      %35 = arith.muli %33, %34 : vector<8x128xi32>
      %36 = arith.addi %35, %29 : vector<8x128xi32>
      %c1024_i32 = arith.constant 1024 : i32
      %37 = vector.broadcast %c1024_i32 : i32 to vector<8x128xi32>
      %38 = arith.cmpi slt, %36, %37 : vector<8x128xi32>
      %39 = vector.shape_cast %38 : vector<8x128xi1> to vector<1x8x128xi1>
      %cst_18 = arith.constant 0.000000e+00 : f32
      %40 = vector.shape_cast %39 : vector<1x8x128xi1> to vector<1x8x128xi1>
      %41 = vector.broadcast %40 : vector<1x8x128xi1> to vector<2x8x128xi1>
      %42 = vector.broadcast %cst_18 : f32 to vector<2x8x128xf32>
      %43 = arith.select %41, %26, %42 : vector<2x8x128xi1>, vector<2x8x128xf32>
      %cst_19 = arith.constant 0.000000e+00 : f32
      %44 = vector.shape_cast %39 : vector<1x8x128xi1> to vector<1x8x128xi1>
      %45 = vector.broadcast %44 : vector<1x8x128xi1> to vector<2x8x128xi1>
      %46 = vector.broadcast %cst_19 : f32 to vector<2x8x128xf32>
      %47 = arith.select %45, %27, %46 : vector<2x8x128xi1>, vector<2x8x128xf32>
      %cst_20 = arith.constant dense<0.000000e+00> : vector<2x128xf32>
      %48 = vector.multi_reduction <add>, %43, %cst_20 [1] : vector<2x8x128xf32> to vector<2x128xf32>
      %49 = arith.addf %4, %48 : vector<2x128xf32>
      %cst_21 = arith.constant dense<0.000000e+00> : vector<2x128xf32>
      %50 = vector.multi_reduction <add>, %47, %cst_21 [1] : vector<2x8x128xf32> to vector<2x128xf32>
      %51 = arith.addf %5, %50 : vector<2x128xf32>
      %c1_i32 = arith.constant 1 : i32
      %cst_22 = arith.constant dense<0.000000e+00> : vector<2xf32>
      %52 = vector.multi_reduction <add>, %49, %cst_22 [1] : vector<2x128xf32> to vector<2xf32>
      %53 = vector.shape_cast %52 : vector<2xf32> to vector<2x1xf32>
      %c0_23 = arith.constant 0 : index
      %c0_24 = arith.constant 0 : index
      %54 = vector.load %arg4[%c0_23, %c0_24] : memref<2x1xf32, #tpu.memory_space<vmem>>, vector<2x1xf32>
      tpu.vector_store %arg4[%c0_23, %c0_24], %53 {strides = array<i32>} : memref<2x1xf32, #tpu.memory_space<vmem>>, vector<2x1xf32>,
      %cst_25 = arith.constant dense<0.000000e+00> : vector<2xf32>
      %55 = vector.multi_reduction <add>, %51, %cst_25 [1] : vector<2x128xf32> to vector<2xf32>
      %56 = vector.shape_cast %55 : vector<2xf32> to vector<2x1xf32>
      %c0_26 = arith.constant 0 : index
      %c0_27 = arith.constant 0 : index
      %57 = vector.load %arg5[%c0_26, %c0_27] : memref<2x1xf32, #tpu.memory_space<vmem>>, vector<2x1xf32>
      tpu.vector_store %arg5[%c0_26, %c0_27], %56 {strides = array<i32>} : memref<2x1xf32, #tpu.memory_space<vmem>>, vector<2x1xf32>,
    } else {
    }
    return
  }
  func.func @transform_0(%arg0: i32, %arg1: i32) -> (i32, i32, i32) {
    %c0_i32 = arith.constant 0 : i32
    %c0_i32_0 = arith.constant 0 : i32
    return %arg0, %arg1, %c0_i32 : i32, i32, i32
  }
  func.func @transform_1(%arg0: i32, %arg1: i32) -> (i32, i32, i32) {
    %c0_i32 = arith.constant 0 : i32
    %c0_i32_0 = arith.constant 0 : i32
    return %arg0, %arg1, %c0_i32 : i32, i32, i32
  }
  func.func @transform_2(%arg0: i32, %arg1: i32) -> (i32, i32) {
    %c0_i32 = arith.constant 0 : i32
    %c0_i32_0 = arith.constant 0 : i32
    return %arg0, %c0_i32 : i32, i32
  }
  func.func @transform_3(%arg0: i32, %arg1: i32) -> (i32, i32) {
    %c0_i32 = arith.constant 0 : i32
    %c0_i32_0 = arith.constant 0 : i32
    return %arg0, %c0_i32 : i32, i32
  }
}

</mosaic_0001>

<bundles_post_ra>
// kernel: dice_loss.1
= control target key start
LH: loop header
LB: loop body
LE: loop exit
PB: predicated region body
PF: predicated region fallthrough
CT: control target
= control target key end

     0   :  { %v179_v0 = vmov 0.0   ;;  %v102_v5 = vlaneseq  ;;  %vm131_vm1 = vcmask 1041409   ;;  %vm152_vm2 = vcmask 1041408   ;;  %s215_s1 = inlined_call_operand.vmem [shape: f32[2,8,128], index: 1, kind: input, shape index: {}]   ;;  %s216_s0 = inlined_call_operand.vmem [shape: bf16[2,8,128], index: 0, kind: input, shape index: {}]   ;;  %s217_s2 = inlined_call_operand.vmem [shape: f32[2,1], index: 2, kind: output, shape index: {0}]   ;;  %s218_s3 = inlined_call_operand.vmem [shape: f32[2,1], index: 3, kind: output, shape index: {1}]  }
   0x1   :  { %17 = vst [vmem:[#allocation2] sm:$0x3] %v179_v0  ;;  %v84_v1 = vld [vmem:[%s215_s1] sm:$0xff]  ;;  %v85_v2 = vld [vmem:[%s215_s1 + $0x8] sm:$0xff]  ;;  %18 = vst [vmem:[#allocation3] sm:$0x3] %v179_v0 }
   0x2   :  { %v90_v3 = vmul.f32 0.5, %v84_v1  ;;  %v91_v4 = vmul.f32 0.5, %v85_v2  ;;  %v103_v6 = vshrl.u32 %v102_v5, 7  ;;  %v105_v7 = vand.u32 127, %v102_v5  ;;  %v171_v9 = vld [vmem:[%s216_s0] sm:$0xff]  }
   0x3   :  { %v172_v13 = vunpack.c.l.bf16 %v171_v9  ;;  %v173_v15 = vunpack.c.h.bf16 %v171_v9  ;;  %vm156_vm3 = vcmask 1024  }
   0x4   :  { %175 = vtanh.f32 %v90_v3  ;;  %v108_v8 = vmul.u32 128, %v103_v6 }
   0x5   :  { %177 = vtanh.f32 %v91_v4 }
   0x6   :  { %v109_v11 = vadd.s32 %v108_v8, %v105_v7 }
   0x8   :  { %vm110_vm0 = vcmp.lt.s32.totalorder %v109_v11, 1024  ;;  %v20_v49 = vld [vmem:[#allocation2] sm:$0x3]  ;;  %v21_v51 = vld [vmem:[#allocation3] sm:$0x3] }
   0xe   :  { %v176_v10 = vpop.eup %175 }
   0xf   :  { %v178_v12 = vpop.eup %177  ;;  %v94_v14 = vadd.f32 1.0, %v176_v10 }
  0x10   :  { %v95_v16 = vadd.f32 1.0, %v178_v12 }
  0x11   :  { %v96_v17 = vmul.f32 0.5, %v94_v14 }
  0x12   :  { %v97_v18 = vmul.f32 0.5, %v95_v16 }
  0x13   :  { %v98_v19 = vmul.f32 %v172_v13, %v96_v17  ;;  %v100_v20 = vadd.f32 %v172_v13, %v96_v17 }
  0x14   :  { %v99_v21 = vmul.f32 %v173_v15, %v97_v18  ;;  %v101_v22 = vadd.f32 %v173_v15, %v97_v18 }
  0x15   :  { %v113_v23 = vsel %vm110_vm0, %v98_v19, 0.0  ;;  %v115_v24 = vsel %vm110_vm0, %v100_v20, 0.0 }
  0x16   :  { %v114_v25 = vsel %vm110_vm0, %v99_v21, 0.0  ;;  %v117_v26 = vrot.slane %v113_v23, 4  ;;  %v116_v27 = vsel %vm110_vm0, %v101_v22, 0.0  ;;  %v135_v28 = vrot.slane %v115_v24, 4 }
  0x17   :  { %v123_v29 = vrot.slane %v114_v25, 4  ;;  %v141_v30 = vrot.slane %v116_v27, 4 }
  0x18   :  { %v118_v31 = vadd.f32 %v117_v26, %v113_v23  ;;  %v136_v32 = vadd.f32 %v135_v28, %v115_v24 }
  0x19   :  { %v124_v33 = vadd.f32 %v123_v29, %v114_v25  ;;  %v142_v34 = vadd.f32 %v141_v30, %v116_v27 }
  0x1a   :  { %v119_v35 = vrot.slane %v118_v31, 2  ;;  %v137_v36 = vrot.slane %v136_v32, 2 }
  0x1b   :  { %v125_v37 = vrot.slane %v124_v33, 2  ;;  %v143_v38 = vrot.slane %v142_v34, 2 }
  0x1c   :  { %v120_v39 = vadd.f32 %v119_v35, %v118_v31  ;;  %v138_v40 = vadd.f32 %v137_v36, %v136_v32 }
  0x1d   :  { %v126_v41 = vadd.f32 %v125_v37, %v124_v33  ;;  %v144_v42 = vadd.f32 %v143_v38, %v142_v34 }
  0x1e   :  { %v121_v43 = vrot.slane %v120_v39, 1  ;;  %v139_v44 = vrot.slane %v138_v40, 1 }
  0x1f   :  { %v127_v45 = vrot.slane %v126_v41, 1  ;;  %v145_v46 = vrot.slane %v144_v42, 1 }
  0x20   :  { %v122_v47 = vadd.f32 %v121_v43, %v120_v39  ;;  %v140_v48 = vadd.f32 %v139_v44, %v138_v40 }
  0x21   :  { %v128_v50 = vadd.f32 %v127_v45, %v126_v41  ;;  %v146_v52 = vadd.f32 %v145_v46, %v144_v42 }
  0x23   :  { %v132_v53 = vsel %vm131_vm1, %v128_v50, %v122_v47  ;;  %v149_v54 = vsel %vm131_vm1, %v146_v52, %v140_v48 }
  0x24   :  { %v134_v55 = vadd.f32 %v132_v53, %v20_v49  ;;  %v151_v56 = vadd.f32 %v149_v54, %v21_v51 }
  0x26   :  { %v153_v57 = vsel %vm152_vm2, %v134_v55, 0.0  ;;  %v158_v58 = vsel %vm152_vm2, %v151_v56, 0.0 }
  0x27   :  { %154 = vadd.xlane.f32.xlu0 %v153_v57 }
  0x2b   :  { %159 = vadd.xlane.f32.xlu0 %v158_v58 }
  0xb4   :  { %v155_v59 = vpop.xlane.xlu0 %154 }
  0xb5   :  { %157 = vst.msk [vmem:[%s217_s2] sm:$0x3] %vm156_vm3, %v155_v59 }
  0xb8   :  { %v160_v60 = vpop.xlane.xlu0 %159 }
  0xb9   :  { %161 = vst.msk [vmem:[%s218_s3] sm:$0x3] %vm156_vm3, %v160_v60 }

</bundles_post_ra>
